<compile_context>
chip_gen: v7x
topology: tpu7x:2x2x1
jax: 0.10.0
libtpu: 0.0.40
codegen_flags: <defaults>
</compile_context>

<pallas_src>
import math
import functools

import jax
import jax.numpy as jnp
import numpy as np
from jax import lax
from jax.experimental import pallas as pl
from jax.experimental.pallas import tpu as pltpu


NEG_LARGE = -1e30                    # large finite "minus inf" (safer than f32 min)
VMEM_LIMIT = 32 * 1024 * 1024        # bytes; raises v5e's 16 MiB scoped default


def _pick_tile(n, candidates):
    """Largest candidate that evenly divides n, else the full extent."""
    for c in candidates:
        if c <= n and n % c == 0:
            return c
    return n


# ---------------------------------------------------------------------------
# Linear kernels (row / K tiled, bf16 MXU inputs, f32 accumulation)
# ---------------------------------------------------------------------------
def _linear_kernel(x_ref, w_ref, b_ref, o_ref, acc_ref):
    """o = x @ w.T + b  with torch Linear weight layout w: (Fout, Fin)."""
    @pl.when(pl.program_id(1) == 0)
    def _init():
        acc_ref[...] = jnp.zeros_like(acc_ref)

    # contraction over both operands' last (Fin) dims -> no transpose of w
    acc_ref[...] += lax.dot_general(
        x_ref[...].astype(jnp.bfloat16), w_ref[...],
        dimension_numbers=(((1,), (1,)), ((), ())),
        preferred_element_type=jnp.float32)

    @pl.when(pl.program_id(1) == pl.num_programs(1) - 1)
    def _finalize():
        o_ref[...] = (acc_ref[...] + b_ref[...]).astype(o_ref.dtype)


def pallas_linear(x, w_bf16, b, out_dtype, *, block_rows=None, block_k=None):
    """x: (N, Fin); w_bf16: (Fout, Fin) bf16; b: (Fout,) -> (N, Fout)."""
    n, fin = x.shape
    fout = w_bf16.shape[0]
    tm = block_rows or _pick_tile(n, (256, 128, 64, 32, 16))
    tk = block_k or _pick_tile(fin, (512, 256, 128))
    return pl.pallas_call(
        _linear_kernel,
        out_shape=jax.ShapeDtypeStruct((n, fout), out_dtype),
        grid=(n // tm, fin // tk),
        in_specs=[
            pl.BlockSpec((tm, tk), lambda i, k: (i, k)),
            pl.BlockSpec((fout, tk), lambda i, k: (0, k)),
            pl.BlockSpec((1, fout), lambda i, k: (0, 0)),
        ],
        out_specs=pl.BlockSpec((tm, fout), lambda i, k: (i, 0)),
        scratch_shapes=[pltpu.VMEM((tm, fout), jnp.float32)],
        compiler_params=pltpu.CompilerParams(
            dimension_semantics=("parallel", "arbitrary"),
            vmem_limit_bytes=VMEM_LIMIT),
    )(x, w_bf16, b.reshape(1, fout).astype(jnp.float32))


def _qkv_linear_kernel(x_ref, w_ref, b_ref, q_ref, k_ref, v_ref, acc_ref, *, n_feat):
    """Fused q/k/v projection: one (tm,K) @ (K,3F) matmul, three outputs."""
    @pl.when(pl.program_id(1) == 0)
    def _init():
        acc_ref[...] = jnp.zeros_like(acc_ref)

    acc_ref[...] += lax.dot_general(
        x_ref[...].astype(jnp.bfloat16), w_ref[...],
        dimension_numbers=(((1,), (1,)), ((), ())),
        preferred_element_type=jnp.float32)

    @pl.when(pl.program_id(1) == pl.num_programs(1) - 1)
    def _finalize():
        y = acc_ref[...] + b_ref[...]
        q_ref[...] = y[:, :n_feat].astype(q_ref.dtype)
        k_ref[...] = y[:, n_feat:2 * n_feat].astype(k_ref.dtype)
        v_ref[...] = y[:, 2 * n_feat:].astype(v_ref.dtype)


def pallas_qkv_linear(x, w_qkv_bf16, b_qkv, n_feat, *, block_rows=None, block_k=None):
    """Self-attention fast path: x: (N, Fin); w_qkv: (3F, Fin) -> (q, k, v) bf16."""
    n, fin = x.shape
    tm = block_rows or _pick_tile(n, (256, 128, 64, 32, 16))
    tk = block_k or _pick_tile(fin, (512, 256, 128))
    out_sd = jax.ShapeDtypeStruct((n, n_feat), jnp.bfloat16)
    kernel = functools.partial(_qkv_linear_kernel, n_feat=n_feat)
    return pl.pallas_call(
        kernel,
        out_shape=(out_sd, out_sd, out_sd),
        grid=(n // tm, fin // tk),
        in_specs=[
            pl.BlockSpec((tm, tk), lambda i, k: (i, k)),
            pl.BlockSpec((3 * n_feat, tk), lambda i, k: (0, k)),
            pl.BlockSpec((1, 3 * n_feat), lambda i, k: (0, 0)),
        ],
        out_specs=(
            pl.BlockSpec((tm, n_feat), lambda i, k: (i, 0)),
            pl.BlockSpec((tm, n_feat), lambda i, k: (i, 0)),
            pl.BlockSpec((tm, n_feat), lambda i, k: (i, 0)),
        ),
        scratch_shapes=[pltpu.VMEM((tm, 3 * n_feat), jnp.float32)],
        compiler_params=pltpu.CompilerParams(
            dimension_semantics=("parallel", "arbitrary"),
            vmem_limit_bytes=VMEM_LIMIT),
    )(x, w_qkv_bf16, b_qkv.reshape(1, 3 * n_feat).astype(jnp.float32))


# ---------------------------------------------------------------------------
# Attention kernel: KV-tiled, online softmax, heads as lane slices of (T, F)
# ---------------------------------------------------------------------------
def _attention_kernel(q_ref, k_ref, v_ref, pk_ref, pv_ref, mask_ref, o_ref,
                      m_scr, l_scr, acc_scr, *, n_head, d_k, scale):
    kv = pl.program_id(1)

    @pl.when(kv == 0)
    def _init():
        m_scr[...] = jnp.full_like(m_scr, NEG_LARGE)
        l_scr[...] = jnp.zeros_like(l_scr)
        acc_scr[...] = jnp.zeros_like(acc_scr)

    invalid = mask_ref[0].astype(jnp.int32) == 0           # (T1, t_kv) bool
    pk = pk_ref[...]                                        # (T1, t_kv, d_k) bf16
    pv = pv_ref[...]                                        # (T1, t_kv, d_k) bf16

    # Static unroll over heads (small H).  For very large H move this to a grid axis.
    for h in range(n_head):
        sl = slice(h * d_k, (h + 1) * d_k)
        q_h = q_ref[0, :, sl]                               # (T1, d_k)   bf16
        k_h = k_ref[0, :, sl]                               # (t_kv, d_k) bf16
        v_h = v_ref[0, :, sl]                               # (t_kv, d_k) bf16

        # content-content: q_h @ k_h^T without a transpose (contract both last dims)
        s = lax.dot_general(q_h, k_h,
                            dimension_numbers=(((1,), (1,)), ((), ())),
                            preferred_element_type=jnp.float32)     # (T1, t_kv)
        # content-position: einsum('td,tsd->ts', q_h, pos_k) as a batched MXU matmul
        s += lax.dot_general(q_h[:, None, :], pk,
                             dimension_numbers=(((2,), (2,)), ((0,), (0,))),
                             preferred_element_type=jnp.float32)[:, 0, :]
        s = s * scale
        s = jnp.where(invalid, NEG_LARGE, s)                # masked_fill before softmax

        m_prev = m_scr[:, h:h + 1]                          # (T1, 1)
        l_prev = l_scr[:, h:h + 1]
        acc_prev = acc_scr[:, sl]                           # (T1, d_k)

        m_new = jnp.maximum(m_prev, jnp.max(s, axis=-1, keepdims=True))
        alpha = jnp.exp(m_prev - m_new)
        p = jnp.exp(s - m_new)
        p = jnp.where(invalid, 0.0, p)                      # masked_fill(mask, 0.0)

        p_b = p.astype(jnp.bfloat16)
        # attn @ v  (MXU)
        x_h = jnp.dot(p_b, v_h, preferred_element_type=jnp.float32)
        # einsum('ts,tsd->td', attn, pos_v) as a batched MXU matmul
        x_h += lax.dot_general(p_b[:, None, :], pv,
                               dimension_numbers=(((2,), (1,)), ((0,), (0,))),
                               preferred_element_type=jnp.float32)[:, 0, :]

        m_scr[:, h:h + 1] = m_new
        l_scr[:, h:h + 1] = alpha * l_prev + jnp.sum(p, axis=-1, keepdims=True)
        acc_scr[:, sl] = alpha * acc_prev + x_h

    @pl.when(kv == pl.num_programs(1) - 1)
    def _finalize():
        l = l_scr[...]                                      # (T1, H)
        # EUP reciprocal; fully-masked rows (l == 0) produce 0 like the reference.
        inv_l = jnp.where(l > 0.0, pl.reciprocal(l, approx=True), 0.0)
        for h in range(n_head):
            sl = slice(h * d_k, (h + 1) * d_k)
            o_ref[0, :, sl] = (acc_scr[:, sl] * inv_l[:, h:h + 1]).astype(o_ref.dtype)


def pallas_attention(q, k, v, pos_k_bf16, pos_v_bf16, mask_i8, n_head, *, block_kv=None):
    """q: (B, T1, F) bf16; k, v: (B, T2, F) bf16; pos_*: (T1, T2, d_k) bf16;
    mask_i8: (B, T1, T2) int8 (0 = masked).  Returns (B, T1, F) bf16."""
    B, T1, F = q.shape
    T2 = k.shape[1]
    d_k = F // n_head
    # kv tile: 128 keeps pos_k/pos_v blocks streamed (O(T1*t_kv*d_k) VMEM) at large T2.
    t_kv = block_kv or _pick_tile(T2, (128,))
    n_kv = T2 // t_kv

    kernel = functools.partial(_attention_kernel, n_head=n_head, d_k=d_k,
                               scale=1.0 / math.sqrt(d_k))
    return pl.pallas_call(
        kernel,
        out_shape=jax.ShapeDtypeStruct((B, T1, F), jnp.bfloat16),
        grid=(B, n_kv),
        in_specs=[
            pl.BlockSpec((1, T1, F), lambda b, s: (b, 0, 0)),        # q (resident over kv)
            pl.BlockSpec((1, t_kv, F), lambda b, s: (b, s, 0)),      # k
            pl.BlockSpec((1, t_kv, F), lambda b, s: (b, s, 0)),      # v
            pl.BlockSpec((T1, t_kv, d_k), lambda b, s: (0, s, 0)),   # pos_k (streamed)
            pl.BlockSpec((T1, t_kv, d_k), lambda b, s: (0, s, 0)),   # pos_v (streamed)
            pl.BlockSpec((1, T1, t_kv), lambda b, s: (b, 0, s)),     # mask (int8)
        ],
        out_specs=pl.BlockSpec((1, T1, F), lambda b, s: (b, 0, 0)),
        scratch_shapes=[
            pltpu.VMEM((T1, n_head), jnp.float32),   # running max  m
            pltpu.VMEM((T1, n_head), jnp.float32),   # running sum  l
            pltpu.VMEM((T1, F), jnp.float32),        # running out  acc
        ],
        compiler_params=pltpu.CompilerParams(
            dimension_semantics=("parallel", "arbitrary"),
            vmem_limit_bytes=VMEM_LIMIT),
    )(q, k, v, pos_k_bf16, pos_v_bf16, mask_i8)


# ---------------------------------------------------------------------------
# Module wrapper (forward pass, eval mode)
# ---------------------------------------------------------------------------
def multi_headed_attention(params, query, key, value, pos_k, pos_v, mask, n_head,
                           *, block_rows=None, block_k=None, block_kv=None):
    B, T1, F = query.shape
    T2 = key.shape[1]

    # bf16 weights for the MXU (f32 accumulation in-kernel).  In a real model the
    # casts/concat would be done once at parameter load time.
    wq = params["q_w"].astype(jnp.bfloat16)
    wk = params["k_w"].astype(jnp.bfloat16)
    wv = params["v_w"].astype(jnp.bfloat16)
    wo = params["out_w"].astype(jnp.bfloat16)

    if (query is key) and (key is value):
        # Self-attention: one fused QKV projection (single DMA pass over the input).
        w_qkv = jnp.concatenate([wq, wk, wv], axis=0)                      # (3F, F)
        b_qkv = jnp.concatenate([params["q_b"], params["k_b"], params["v_b"]])
        q2, k2, v2 = pallas_qkv_linear(query.reshape(-1, F), w_qkv, b_qkv, F,
                                       block_rows=block_rows, block_k=block_k)
    else:
        q2 = pallas_linear(query.reshape(-1, F), wq, params["q_b"], jnp.bfloat16,
                           block_rows=block_rows, block_k=block_k)
        k2 = pallas_linear(key.reshape(-1, F), wk, params["k_b"], jnp.bfloat16,
                           block_rows=block_rows, block_k=block_k)
        v2 = pallas_linear(value.reshape(-1, F), wv, params["v_b"], jnp.bfloat16,
                           block_rows=block_rows, block_k=block_k)

    q = q2.reshape(B, T1, F)      # stays (B, T, F): heads are lane slices in-kernel
    k = k2.reshape(B, T2, F)
    v = v2.reshape(B, T2, F)

    mask_i8 = (mask != 0).astype(jnp.int8)        # 4x smaller mask DMA than f32
    x = pallas_attention(q, k, v,
                         pos_k.astype(jnp.bfloat16), pos_v.astype(jnp.bfloat16),
                         mask_i8, n_head, block_kv=block_kv)           # (B, T1, F)

    out = pallas_linear(x.reshape(-1, F), wo, params["out_b"], jnp.float32,
                        block_rows=block_rows, block_k=block_k)
    return out.reshape(B, T1, F)


# ---------------------------------------------------------------------------
# Pure-JAX f32 reference mirroring the PyTorch forward
# ---------------------------------------------------------------------------
def reference_mha(params, query, key, value, pos_k, pos_v, mask, n_head):
    B, T1, F = query.shape
    T2 = key.shape[1]
    d_k = F // n_head

    def lin(name, x):
        return x @ params[name + "_w"].T + params[name + "_b"]

    q = lin("q", query).reshape(B, T1, n_head, d_k).transpose(0, 2, 1, 3)
    k = lin("k", key).reshape(B, T2, n_head, d_k).transpose(0, 2, 1, 3)
    v = lin("v", value).reshape(B, T2, n_head, d_k).transpose(0, 2, 1, 3)

    A = jnp.einsum("bhtd,bhsd->bhts", q, k)
    Bm = jnp.einsum("bhtd,tsd->bhts", q, pos_k)
    scores = (A + Bm) / math.sqrt(d_k)
    m = (mask[:, None, :, :] == 0.0)
    scores = jnp.where(m, jnp.finfo(jnp.float32).min, scores)
    attn = jax.nn.softmax(scores, axis=-1)
    attn = jnp.where(m, 0.0, attn)
    x = jnp.einsum("bhts,bhsd->bhtd", attn, v)
    x = x + jnp.einsum("bhts,tsd->bhtd", attn, pos_v)
    x = x.transpose(0, 2, 1, 3).reshape(B, T1, F)
    return x @ params["out_w"].T + params["out_b"]


# ---------------------------------------------------------------------------
# Main
# ---------------------------------------------------------------------------
if __name__ == "__main__":
    B, T, F, H = 2, 16, 256, 4
    d_k = F // H

    key0 = jax.random.PRNGKey(0)
    ks = jax.random.split(key0, 16)

    w_scale = 1.0 / math.sqrt(F)
    params = {
        "q_w":   jax.random.normal(ks[0], (F, F), jnp.float32) * w_scale,
        "q_b":   jax.random.normal(ks[1], (F,), jnp.float32) * 0.1,
        "k_w":   jax.random.normal(ks[2], (F, F), jnp.float32) * w_scale,
        "k_b":   jax.random.normal(ks[3], (F,), jnp.float32) * 0.1,
        "v_w":   jax.random.normal(ks[4], (F, F), jnp.float32) * w_scale,
        "v_b":   jax.random.normal(ks[5], (F,), jnp.float32) * 0.1,
        "out_w": jax.random.normal(ks[6], (F, F), jnp.float32) * w_scale,
        "out_b": jax.random.normal(ks[7], (F,), jnp.float32) * 0.1,
    }

    x_self = jax.random.normal(ks[8], (B, T, F), jnp.float32)
    query = jax.random.normal(ks[9], (B, T, F), jnp.float32)
    key_t = jax.random.normal(ks[10], (B, T, F), jnp.float32)
    value = jax.random.normal(ks[14], (B, T, F), jnp.float32)
    pos_k = jax.random.normal(ks[11], (T, T, d_k), jnp.float32)
    pos_v = jax.random.normal(ks[12], (T, T, d_k), jnp.float32)

    # binary mask (B, T1, T2); ensure every row has at least one valid slot
    mask = (jax.random.uniform(ks[13], (B, T, T)) > 0.3).astype(jnp.float32)
    mask = jnp.maximum(mask, jnp.eye(T, dtype=jnp.float32)[None])

    # Tolerances are loosened vs. the f32 reference because MXU inputs are bf16
    # (accumulation stays f32).
    TOL = dict(rtol=3e-2, atol=3e-2)

    # 1) self-attention: fused QKV projection path, auto tile sizes
    out1 = multi_headed_attention(params, x_self, x_self, x_self,
                                  pos_k, pos_v, mask, H)
    out1 = jax.block_until_ready(out1)
    ref1 = reference_mha(params, x_self, x_self, x_self, pos_k, pos_v, mask, H)
    np.testing.assert_allclose(np.asarray(out1), np.asarray(ref1), **TOL)

    # 2) distinct q/k/v: separate projections, forced small tiles so the
    #    row-parallel / K-accumulation pipeline is exercised (grid > 1 per axis)
    out2 = multi_headed_attention(params, query, key_t, value,
                                  pos_k, pos_v, mask, H,
                                  block_rows=16, block_k=128)
    out2 = jax.block_until_ready(out2)
    ref2 = reference_mha(params, query, key_t, value, pos_k, pos_v, mask, H)
    np.testing.assert_allclose(np.asarray(out2), np.asarray(ref2), **TOL)

    print("KERNEL_OK")
</pallas_src>

<mosaic_0001>
module attributes {stable_mosaic.version = 11 : i64} {
  func.func @_qkv_linear_kernel(%arg0: i32, %arg1: i32, %arg2: memref<32x256xf32, #tpu.memory_space<vmem>>, %arg3: memref<768x256xbf16, #tpu.memory_space<vmem>>, %arg4: memref<1x768xf32, #tpu.memory_space<vmem>>, %arg5: memref<32x256xbf16, #tpu.memory_space<vmem>>, %arg6: memref<32x256xbf16, #tpu.memory_space<vmem>>, %arg7: memref<32x256xbf16, #tpu.memory_space<vmem>>, %arg8: memref<32x768xf32, #tpu.memory_space<vmem>>) attributes {dimension_semantics = [#tpu.dimension_semantics<parallel>, #tpu.dimension_semantics<arbitrary>], iteration_bounds = array<i64: 1, 1>, scalar_prefetch = 0 : i64, scratch_operands = 1 : i64, tpu.core_type = #tpu.core_type<tc>, window_params = [{transform_indices = @transform_0, window_bounds = array<i64: 32, 256>}, {transform_indices = @transform_1, window_bounds = array<i64: 768, 256>}, {pipeline_mode = #tpu.pipeline_mode<synchronous>, transform_indices = @transform_2, window_bounds = array<i64: 1, 768>}, {transform_indices = @transform_3, window_bounds = array<i64: 32, 256>}, {transform_indices = @transform_4, window_bounds = array<i64: 32, 256>}, {transform_indices = @transform_5, window_bounds = array<i64: 32, 256>}]} {
    %c0_i32 = arith.constant 0 : i32
    %0 = arith.cmpi eq, %arg1, %c0_i32 : i32
    %1 = arith.extui %0 : i1 to i32
    %c0_i32_0 = arith.constant 0 : i32
    %2 = arith.cmpi ne, %1, %c0_i32_0 : i32
    scf.if %2 {
      %cst_10 = arith.constant 0.000000e+00 : f32
      %13 = vector.broadcast %cst_10 : f32 to vector<32x768xf32>
      %c0_11 = arith.constant 0 : index
      %c0_12 = arith.constant 0 : index
      %14 = vector.load %arg8[%c0_11, %c0_12] : memref<32x768xf32, #tpu.memory_space<vmem>>, vector<32x768xf32>
      tpu.vector_store %arg8[%c0_11, %c0_12], %13 {strides = array<i32>} : memref<32x768xf32, #tpu.memory_space<vmem>>, vector<32x768xf32>,
    } else {
    }
    %c0 = arith.constant 0 : index
    %c0_1 = arith.constant 0 : index
    %3 = vector.load %arg8[%c0, %c0_1] : memref<32x768xf32, #tpu.memory_space<vmem>>, vector<32x768xf32>
    %c0_2 = arith.constant 0 : index
    %c0_3 = arith.constant 0 : index
    %4 = vector.load %arg2[%c0_2, %c0_3] : memref<32x256xf32, #tpu.memory_space<vmem>>, vector<32x256xf32>
    %5 = arith.truncf %4 : vector<32x256xf32> to vector<32x256xbf16>
    %c0_4 = arith.constant 0 : index
    %c0_5 = arith.constant 0 : index
    %6 = vector.load %arg3[%c0_4, %c0_5] : memref<768x256xbf16, #tpu.memory_space<vmem>>, vector<768x256xbf16>
    %cst = arith.constant dense<0.000000e+00> : vector<32x768xf32>
    %7 = tpu.matmul %5, %6, %cst {dimension_numbers = #tpu.dot_dimension_numbers<[1], [1], [0], [0], [0, 0, 1, 0], [], []>} : vector<32x256xbf16>, vector<768x256xbf16>, vector<32x768xf32> -> vector<32x768xf32>
    %8 = arith.addf %3, %7 : vector<32x768xf32>
    %c0_6 = arith.constant 0 : index
    %c0_7 = arith.constant 0 : index
    %9 = vector.load %arg8[%c0_6, %c0_7] : memref<32x768xf32, #tpu.memory_space<vmem>>, vector<32x768xf32>
    tpu.vector_store %arg8[%c0_6, %c0_7], %8 {strides = array<i32>} : memref<32x768xf32, #tpu.memory_space<vmem>>, vector<32x768xf32>,
    %c0_i32_8 = arith.constant 0 : i32
    %10 = arith.cmpi eq, %arg1, %c0_i32_8 : i32
    %11 = arith.extui %10 : i1 to i32
    %c0_i32_9 = arith.constant 0 : i32
    %12 = arith.cmpi ne, %11, %c0_i32_9 : i32
    scf.if %12 {
      %c0_10 = arith.constant 0 : index
      %c0_11 = arith.constant 0 : index
      %13 = vector.load %arg8[%c0_10, %c0_11] : memref<32x768xf32, #tpu.memory_space<vmem>>, vector<32x768xf32>
      %c0_12 = arith.constant 0 : index
      %c0_13 = arith.constant 0 : index
      %14 = vector.load %arg4[%c0_12, %c0_13] : memref<1x768xf32, #tpu.memory_space<vmem>>, vector<1x768xf32>
      %15 = vector.broadcast %14 : vector<1x768xf32> to vector<32x768xf32>
      %16 = arith.addf %13, %15 : vector<32x768xf32>
      %17 = vector.extract_strided_slice %16 {offsets = [0, 0], sizes = [32, 256], strides = [1, 1]} : vector<32x768xf32> to vector<32x256xf32>
      %18 = arith.truncf %17 : vector<32x256xf32> to vector<32x256xbf16>
      %c0_14 = arith.constant 0 : index
      %c0_15 = arith.constant 0 : index
      %19 = vector.load %arg5[%c0_14, %c0_15] : memref<32x256xbf16, #tpu.memory_space<vmem>>, vector<32x256xbf16>
      tpu.vector_store %arg5[%c0_14, %c0_15], %18 {strides = array<i32>} : memref<32x256xbf16, #tpu.memory_space<vmem>>, vector<32x256xbf16>,
      %20 = vector.extract_strided_slice %16 {offsets = [0, 256], sizes = [32, 256], strides = [1, 1]} : vector<32x768xf32> to vector<32x256xf32>
      %21 = arith.truncf %20 : vector<32x256xf32> to vector<32x256xbf16>
      %c0_16 = arith.constant 0 : index
      %c0_17 = arith.constant 0 : index
      %22 = vector.load %arg6[%c0_16, %c0_17] : memref<32x256xbf16, #tpu.memory_space<vmem>>, vector<32x256xbf16>
      tpu.vector_store %arg6[%c0_16, %c0_17], %21 {strides = array<i32>} : memref<32x256xbf16, #tpu.memory_space<vmem>>, vector<32x256xbf16>,
      %23 = vector.extract_strided_slice %16 {offsets = [0, 512], sizes = [32, 256], strides = [1, 1]} : vector<32x768xf32> to vector<32x256xf32>
      %24 = arith.truncf %23 : vector<32x256xf32> to vector<32x256xbf16>
      %c0_18 = arith.constant 0 : index
      %c0_19 = arith.constant 0 : index
      %25 = vector.load %arg7[%c0_18, %c0_19] : memref<32x256xbf16, #tpu.memory_space<vmem>>, vector<32x256xbf16>
      tpu.vector_store %arg7[%c0_18, %c0_19], %24 {strides = array<i32>} : memref<32x256xbf16, #tpu.memory_space<vmem>>, vector<32x256xbf16>,
    } else {
    }
    return
  }
  func.func @transform_0(%arg0: i32, %arg1: i32) -> (i32, i32) {
    %c0_i32 = arith.constant 0 : i32
    return %arg0, %arg1 : i32, i32
  }
  func.func @transform_1(%arg0: i32, %arg1: i32) -> (i32, i32) {
    %c0_i32 = arith.constant 0 : i32
    %c0_i32_0 = arith.constant 0 : i32
    return %c0_i32, %arg1 : i32, i32
  }
  func.func @transform_2(%arg0: i32, %arg1: i32) -> (i32, i32) {
    %c0_i32 = arith.constant 0 : i32
    %c0_i32_0 = arith.constant 0 : i32
    %c0_i32_1 = arith.constant 0 : i32
    return %c0_i32, %c0_i32_0 : i32, i32
  }
  func.func @transform_3(%arg0: i32, %arg1: i32) -> (i32, i32) {
    %c0_i32 = arith.constant 0 : i32
    %c0_i32_0 = arith.constant 0 : i32
    return %arg0, %c0_i32 : i32, i32
  }
  func.func @transform_4(%arg0: i32, %arg1: i32) -> (i32, i32) {
    %c0_i32 = arith.constant 0 : i32
    %c0_i32_0 = arith.constant 0 : i32
    return %arg0, %c0_i32 : i32, i32
  }
  func.func @transform_5(%arg0: i32, %arg1: i32) -> (i32, i32) {
    %c0_i32 = arith.constant 0 : i32
    %c0_i32_0 = arith.constant 0 : i32
    return %arg0, %c0_i32 : i32, i32
  }
}

</mosaic_0001>

<bundles_post_ra>
// kernel: tpu_custom_call.1
= control target key start
LH: loop header
LB: loop body
LE: loop exit
PB: predicated region body
PF: predicated region fallthrough
CT: control target
= control target key end

     0   :  { %11 = vsyncpa [#allocation4], 0  ;;  %s1685_s0 = inlined_call_operand.hbm [shape: f32[32,256], index: 0, kind: input, shape index: {}]   ;;  %s1686_s1 = inlined_call_operand.hbm [shape: bf16[768,256], index: 1, kind: input, shape index: {}]   ;;  %s1687_s2 = inlined_call_operand.vmem [shape: f32[1,768], index: 2, kind: input, shape index: {}]   ;;  %s1688_s3 = inlined_call_operand.hbm [shape: bf16[32,256], index: 3, kind: output, shape index: {0}]   ;;  %s1689_s4 = inlined_call_operand.hbm [shape: bf16[32,256], index: 4, kind: output, shape index: {1}]   ;;  %s1690_s5 = inlined_call_operand.hbm [shape: bf16[32,256], index: 5, kind: output, shape index: {2}]  }
   0x1   :  { %12 = vsyncpa [#allocation7], 0 }
   0x2   :  { %13 = vsyncpa [#allocation5], 0 }
   0x3   :  { %14 = vsyncpa [#allocation10], 0  ;;  %s1533_s18 = smov [#allocation3]   ;;  %s1415_s22 = scalar_lea.hbm %s1685_s0, 1024 }
   0x4   :  { %s20_s19 = sshll.u32 %s1533_s18, 4  ;;  %p1416_p0 = scmp.ne.s32.totalorder %s1685_s0, %s1415_s22  ;;  %s21_s19 = int_to_ptr.vmem [resolvable:$true] %s20_s19 }
   0x5   :  { %p1419_p1 = scmp.lt.u32.totalorder %s1415_s22, %s1685_s0 }
   0x7   :  { %p1421_p2 = pnand %p1419_p1, %p1416_p0 }
   0x9   :  { %1424 = shalt.err (!%p1421_p2)
}
   0xa   :  { %s1425_s27 = scalar_lea.vmem %s21_s19, 1024  ;;  %p1430_p4 = scmp.lt.s32.totalorder %s21_s19, %s21_s19 }
   0xb   :  { %p1426_p3 = scmp.ne.s32.totalorder %s21_s19, %s1425_s27  ;;  %p1431_p5 = scmp.lt.s32.totalorder %s1425_s27, %s1425_s27 }
   0xd   :  { %p1432_p6 = por %p1431_p5, %p1430_p4 }
   0xf   :  { %p1433_p7 = pnand %p1432_p6, %p1426_p3 }
  0x11   :  { %1436 = shalt.err (!%p1433_p7)
}
  0x12   :  { %s1534_s28 = smov 256   ;;  %s1535_s29 = smov 16  }
  0x13   :  { %26 = dma.hbm_to_vmem [thread:$0]  %s1685_s0, 1024, %s21_s19, [#allocation4], %s1534_s28, %s1534_s28, %s1535_s29  }
  0x14   :  { %s1536_s7 = smov [#allocation6]   ;;  %s1437_s11 = scalar_lea.hbm %s1686_s1, 12288 }
  0x15   :  { %s32_s8 = sshll.u32 %s1536_s7, 4  ;;  %p1438_p8 = scmp.ne.s32.totalorder %s1686_s1, %s1437_s11  ;;  %s33_s8 = int_to_ptr.vmem [resolvable:$true] %s32_s8 }
  0x16   :  { %p1441_p9 = scmp.lt.u32.totalorder %s1437_s11, %s1686_s1 }
  0x18   :  { %p1443_p10 = pnand %p1441_p9, %p1438_p8 }
  0x1a   :  { %1446 = shalt.err (!%p1443_p10)
}
  0x1b   :  { %s1447_s16 = scalar_lea.vmem %s33_s8, 12288  ;;  %p1452_p12 = scmp.lt.s32.totalorder %s33_s8, %s33_s8 }
  0x1c   :  { %p1448_p11 = scmp.ne.s32.totalorder %s33_s8, %s1447_s16  ;;  %p1453_p13 = scmp.lt.s32.totalorder %s1447_s16, %s1447_s16 }
  0x1e   :  { %p1454_p0 = por %p1453_p13, %p1452_p12 }
  0x20   :  { %p1455_p1 = pnand %p1454_p0, %p1448_p11 }
  0x22   :  { %1458 = shalt.err (!%p1455_p1)
}
  0x23   :  { %s1537_s0 = smov 128   ;;  %s1538_s17 = smov 8  }
  0x24   :  { %38 = dma.hbm_to_vmem [thread:$0]  %s1686_s1, 12288, %s33_s8, [#allocation7], %s1537_s0, %s1537_s0, %s1538_s17  }
  0x25   :  { %1525 = dma.done.wait [#allocation4], 1024  }
  0x26   :  { %1526 = vsyncadd [#allocation4], 4294966272 }
  0x27   :  { %1527 = dma.done.wait [#allocation7], 12288  }
  0x28   :  { %1528 = vsyncadd [#allocation7], 4294955008  ;;  %v1271_v0 = vld [vmem:[#allocation6 + $0x4] ss:$8 sps:$4 sm:$0xff]   ;;  %v1275_v2 = vld [vmem:[#allocation6] ss:$8 sps:$4 sm:$0xff]  }
  0x29   :  { %v1273_v1 = vld [vmem:[#allocation6 + $0x104] ss:$8 sps:$4 sm:$0xff]   ;;  %687 = vmatprep.subr.bf16.mxu0 %v1271_v0  ;;  %v1276_v3 = vld [vmem:[#allocation6 + $0x100] ss:$8 sps:$4 sm:$0xff]   ;;  %v1277_v4 = vld [vmem:[#allocation6 + $0x14] ss:$8 sps:$4 sm:$0xff]  }
  0x2a   :  { %740 = vmatprep.subr.bf16.mxu1 %v1273_v1  ;;  %688 = vmatpush1.bf16.xpose.msra.mxu0 %v1275_v2  ;;  %v1279_v5 = vld [vmem:[#allocation6 + $0x114] ss:$8 sps:$4 sm:$0xff]   ;;  %v1281_v6 = vld [vmem:[#allocation6 + $0x10] ss:$8 sps:$4 sm:$0xff]   ;;  %v1283_v8 = vld [vmem:[#allocation6 + $0x24] ss:$8 sps:$4 sm:$0xff]  }
  0x2b   :  { %741 = vmatpush1.bf16.xpose.msra.mxu1 %v1276_v3  ;;  %689 = vmatprep.subr.bf16.mxu0 %v1277_v4  ;;  %v1282_v7 = vld [vmem:[#allocation6 + $0x110] ss:$8 sps:$4 sm:$0xff]   ;;  %v1285_v9 = vld [vmem:[#allocation6 + $0x124] ss:$8 sps:$4 sm:$0xff]   ;;  %v1287_v10 = vld [vmem:[#allocation6 + $0x20] ss:$8 sps:$4 sm:$0xff]  }
  0x2c   :  { %742 = vmatprep.subr.bf16.mxu1 %v1279_v5  ;;  %v1288_v11 = vld [vmem:[#allocation6 + $0x120] ss:$8 sps:$4 sm:$0xff]   ;;  %v1289_v12 = vld [vmem:[#allocation6 + $0x34] ss:$8 sps:$4 sm:$0xff]   ;;  %v1293_v14 = vld [vmem:[#allocation6 + $0x30] ss:$8 sps:$4 sm:$0xff]  }
  0x2d   :  { %v1291_v13 = vld [vmem:[#allocation6 + $0x134] ss:$8 sps:$4 sm:$0xff]   ;;  %v1294_v15 = vld [vmem:[#allocation6 + $0x130] ss:$8 sps:$4 sm:$0xff]   ;;  %v1295_v16 = vld [vmem:[#allocation6 + $0x44] ss:$8 sps:$4 sm:$0xff]  }
  0x2e   :  { %v1297_v17 = vld [vmem:[#allocation6 + $0x144] ss:$8 sps:$4 sm:$0xff]   ;;  %v1299_v18 = vld [vmem:[#allocation6 + $0x40] ss:$8 sps:$4 sm:$0xff]   ;;  %v1301_v20 = vld [vmem:[#allocation6 + $0x54] ss:$8 sps:$4 sm:$0xff]  }
  0x2f   :  { %v1300_v19 = vld [vmem:[#allocation6 + $0x140] ss:$8 sps:$4 sm:$0xff]   ;;  %v1303_v21 = vld [vmem:[#allocation6 + $0x154] ss:$8 sps:$4 sm:$0xff]   ;;  %v1305_v22 = vld [vmem:[#allocation6 + $0x50] ss:$8 sps:$4 sm:$0xff]  }
  0x30   :  { %v1306_v23 = vld [vmem:[#allocation6 + $0x150] ss:$8 sps:$4 sm:$0xff]   ;;  %v1307_v24 = vld [vmem:[#allocation6 + $0x64] ss:$8 sps:$4 sm:$0xff]   ;;  %v1311_v29 = vld [vmem:[#allocation6 + $0x60] ss:$8 sps:$4 sm:$0xff]  }
  0x31   :  { %v1309_v25 = vld [vmem:[#allocation6 + $0x164] ss:$8 sps:$4 sm:$0xff]   ;;  %v102_v27 = vld [vmem:[#allocation3 + $0x18] sm:$0xff]  ;;  %v1312_v30 = vld [vmem:[#allocation6 + $0x160] ss:$8 sps:$4 sm:$0xff]   ;;  %s1540_s22 = smov [#allocation8]  }
  0x32   :  { %690 = vmatpush1.bf16.xpose.msra.mxu0 %v1281_v6  ;;  %v100_v26 = vld [vmem:[#allocation3 + $0x8] sm:$0xff]  ;;  %v1313_v31 = vld [vmem:[#allocation6 + $0x74] ss:$8 sps:$4 sm:$0xff]   ;;  %v1317_v33 = vld [vmem:[#allocation6 + $0x70] ss:$8 sps:$4 sm:$0xff]   ;;  %s1066_s23 = sshll.u32 %s1540_s22, 4  ;;  %s1629_s23 = int_to_ptr.vmem [resolvable:$true] %s1066_s23 }
  0x33   :  { %743 = vmatpush1.bf16.xpose.msra.mxu1 %v1282_v7  ;;  %691 = vmatprep.subr.bf16.mxu0 %v1283_v8  ;;  %v1599_v28 = vpack.c.bf16 %v102_v27, %v100_v26  ;;  %v1315_v32 = vld [vmem:[#allocation6 + $0x174] ss:$8 sps:$4 sm:$0xff]   ;;  %v1318_v34 = vld [vmem:[#allocation6 + $0x170] ss:$8 sps:$4 sm:$0xff]   ;;  %v1319_v35 = vld [vmem:[#allocation6 + $0x84] ss:$8 sps:$4 sm:$0xff]  }
  0x34   :  { %744 = vmatprep.subr.bf16.mxu1 %v1285_v9  ;;  %v1321_v36 = vld [vmem:[#allocation6 + $0x184] ss:$8 sps:$4 sm:$0xff]   ;;  %v1323_v37 = vld [vmem:[#allocation6 + $0x80] ss:$8 sps:$4 sm:$0xff]   ;;  %v1325_v39 = vld [vmem:[#allocation6 + $0x94] ss:$8 sps:$4 sm:$0xff]  }
  0x35   :  { %719 = vmatprep.mubr.bf16.mxu0 %v1599_v28  ;;  %772 = vmatprep.mubr.bf16.mxu1 %v1599_v28  ;;  %v1324_v38 = vld [vmem:[#allocation6 + $0x180] ss:$8 sps:$4 sm:$0xff]   ;;  %v1327_v40 = vld [vmem:[#allocation6 + $0x194] ss:$8 sps:$4 sm:$0xff]   ;;  %v1329_v41 = vld [vmem:[#allocation6 + $0x90] ss:$8 sps:$4 sm:$0xff]  }
  0x36   :  { %v1330_v42 = vld [vmem:[#allocation6 + $0x190] ss:$8 sps:$4 sm:$0xff]   ;;  %v1331_v43 = vld [vmem:[#allocation6 + $0xa4] ss:$8 sps:$4 sm:$0xff]   ;;  %v1335_v45 = vld [vmem:[#allocation6 + $0xa0] ss:$8 sps:$4 sm:$0xff]  }
  0x37   :  { %v1333_v44 = vld [vmem:[#allocation6 + $0x1a4] ss:$8 sps:$4 sm:$0xff]   ;;  %v1336_v46 = vld [vmem:[#allocation6 + $0x1a0] ss:$8 sps:$4 sm:$0xff]   ;;  %v1337_v47 = vld [vmem:[#allocation6 + $0xb4] ss:$8 sps:$4 sm:$0xff]  }
  0x38   :  { %v1339_v48 = vld [vmem:[#allocation6 + $0x1b4] ss:$8 sps:$4 sm:$0xff]   ;;  %v1341_v49 = vld [vmem:[#allocation6 + $0xb0] ss:$8 sps:$4 sm:$0xff]   ;;  %v1343_v51 = vld [vmem:[#allocation6 + $0xc4] ss:$8 sps:$4 sm:$0xff]  }
  0x39   :  { %v1342_v50 = vld [vmem:[#allocation6 + $0x1b0] ss:$8 sps:$4 sm:$0xff]   ;;  %v1345_v52 = vld [vmem:[#allocation6 + $0x1c4] ss:$8 sps:$4 sm:$0xff]   ;;  %v1347_v53 = vld [vmem:[#allocation6 + $0xc0] ss:$8 sps:$4 sm:$0xff]  }
  0x3a   :  { %692 = vmatpush1.bf16.xpose.msra.mxu0 %v1287_v10  ;;  %v1348_v54 = vld [vmem:[#allocation6 + $0x1c0] ss:$8 sps:$4 sm:$0xff]   ;;  %v1349_v55 = vld [vmem:[#allocation6 + $0xd4] ss:$8 sps:$4 sm:$0xff]   ;;  %v1353_v57 = vld [vmem:[#allocation6 + $0xd0] ss:$8 sps:$4 sm:$0xff]  }
  0x3b   :  { %745 = vmatpush1.bf16.xpose.msra.mxu1 %v1288_v11  ;;  %693 = vmatprep.subr.bf16.mxu0 %v1289_v12  ;;  %v1351_v56 = vld [vmem:[#allocation6 + $0x1d4] ss:$8 sps:$4 sm:$0xff]   ;;  %v1354_v58 = vld [vmem:[#allocation6 + $0x1d0] ss:$8 sps:$4 sm:$0xff]   ;;  %v1355_v59 = vld [vmem:[#allocation6 + $0xe4] ss:$8 sps:$4 sm:$0xff]  }
  0x3c   :  { %746 = vmatprep.subr.bf16.mxu1 %v1291_v13  ;;  %v1357_v60 = vld [vmem:[#allocation6 + $0x1e4] ss:$8 sps:$4 sm:$0xff]   ;;  %v1359_v61 = vld [vmem:[#allocation6 + $0xe0] ss:$8 sps:$4 sm:$0xff]   ;;  %v1361_v63 = vld [vmem:[#allocation6 + $0xf4] ss:$8 sps:$4 sm:$0xff]  }
  0x3d   :  { %v1360_v62 = vld [vmem:[#allocation6 + $0x1e0] ss:$8 sps:$4 sm:$0xff]   ;;  %v1363_v0 = vld [vmem:[#allocation6 + $0x1f4] ss:$8 sps:$4 sm:$0xff]   ;;  %v1365_v1 = vld [vmem:[#allocation6 + $0xf0] ss:$8 sps:$4 sm:$0xff]  }
  0x3e   :  { %v1366_v2 = vld [vmem:[#allocation6 + $0x1f0] ss:$8 sps:$4 sm:$0xff]   ;;  %v1369_v3 = vld [vmem:[#allocation6 + $0x204] ss:$8 sps:$4 sm:$0xff]   ;;  %v1367_v9 = vld [vmem:[#allocation6 + $0x200] ss:$8 sps:$4 sm:$0xff]  }
  0x3f   :  { %v99_v4 = vld [vmem:[#allocation3] sm:$0xff]  ;;  %v101_v5 = vld [vmem:[#allocation3 + $0x10] sm:$0xff]  ;;  %v104_v7 = vld [vmem:[#allocation3 + $0x28] sm:$0xff] }
  0x40   :  { %v1603_v6 = vpack.c.bf16 %v101_v5, %v99_v4  ;;  %v106_v8 = vld [vmem:[#allocation3 + $0x38] sm:$0xff]  ;;  %v103_v12 = vld [vmem:[#allocation3 + $0x20] sm:$0xff]  ;;  %v105_v13 = vld [vmem:[#allocation3 + $0x30] sm:$0xff] }
  0x41   :  { %v1372_v10 = vld [vmem:[#allocation6 + $0x214] ss:$8 sps:$4 sm:$0xff]   ;;  %v110_v11 = vpack.c.bf16 %v106_v8, %v104_v7  ;;  %v1388_v27 = vld [vmem:[#allocation6 + $0x270] ss:$8 sps:$4 sm:$0xff]  }
  0x42   :  { %694 = vmatpush1.bf16.xpose.msra.mxu0 %v1293_v14  ;;  %v1607_v14 = vpack.c.bf16 %v105_v13, %v103_v12  ;;  %v1390_v26 = vld [vmem:[#allocation6 + $0x274] ss:$8 sps:$4 sm:$0xff]  }
  0x43   :  { %747 = vmatpush1.bf16.xpose.msra.mxu1 %v1294_v15  ;;  %695 = vmatprep.subr.bf16.mxu0 %v1295_v16  ;;  %v1370_v15 = vld [vmem:[#allocation6 + $0x210] ss:$8 sps:$4 sm:$0xff]   ;;  %v1375_v16 = vld [vmem:[#allocation6 + $0x224] ss:$8 sps:$4 sm:$0xff]  }
  0x44   :  { %748 = vmatprep.subr.bf16.mxu1 %v1297_v17  ;;  %v1373_v17 = vld [vmem:[#allocation6 + $0x220] ss:$8 sps:$4 sm:$0xff]  }
  0x4a   :  { %696 = vmatpush1.bf16.xpose.msra.mxu0 %v1299_v18  ;;  %v1378_v18 = vld [vmem:[#allocation6 + $0x234] ss:$8 sps:$4 sm:$0xff]  }
  0x4b   :  { %749 = vmatpush1.bf16.xpose.msra.mxu1 %v1300_v19  ;;  %697 = vmatprep.subr.bf16.mxu0 %v1301_v20  ;;  %v1376_v19 = vld [vmem:[#allocation6 + $0x230] ss:$8 sps:$4 sm:$0xff]   ;;  %v1381_v20 = vld [vmem:[#allocation6 + $0x244] ss:$8 sps:$4 sm:$0xff]  }
  0x4c   :  { %750 = vmatprep.subr.bf16.mxu1 %v1303_v21  ;;  %v1379_v21 = vld [vmem:[#allocation6 + $0x240] ss:$8 sps:$4 sm:$0xff]  }
  0x52   :  { %698 = vmatpush1.bf16.xpose.msra.mxu0 %v1305_v22  ;;  %v1384_v22 = vld [vmem:[#allocation6 + $0x254] ss:$8 sps:$4 sm:$0xff]  }
  0x53   :  { %751 = vmatpush1.bf16.xpose.msra.mxu1 %v1306_v23  ;;  %699 = vmatprep.subr.bf16.mxu0 %v1307_v24  ;;  %v1382_v23 = vld [vmem:[#allocation6 + $0x250] ss:$8 sps:$4 sm:$0xff]   ;;  %v1387_v24 = vld [vmem:[#allocation6 + $0x264] ss:$8 sps:$4 sm:$0xff]  }
  0x54   :  { %752 = vmatprep.subr.bf16.mxu1 %v1309_v25  ;;  %v1385_v25 = vld [vmem:[#allocation6 + $0x260] ss:$8 sps:$4 sm:$0xff]  }
  0x5a   :  { %700 = vmatpush1.bf16.xpose.msra.mxu0 %v1311_v29  ;;  %v1391_v29 = vld [vmem:[#allocation6 + $0x280] ss:$8 sps:$4 sm:$0xff]  }
  0x5b   :  { %753 = vmatpush1.bf16.xpose.msra.mxu1 %v1312_v30  ;;  %701 = vmatprep.subr.bf16.mxu0 %v1313_v31  ;;  %v1396_v30 = vld [vmem:[#allocation6 + $0x294] ss:$8 sps:$4 sm:$0xff]   ;;  %v1394_v31 = vld [vmem:[#allocation6 + $0x290] ss:$8 sps:$4 sm:$0xff]  }
  0x5c   :  { %754 = vmatprep.subr.bf16.mxu1 %v1315_v32  ;;  %v1399_v32 = vld [vmem:[#allocation6 + $0x2a4] ss:$8 sps:$4 sm:$0xff]  }
  0x62   :  { %702 = vmatpush1.bf16.xpose.msra.mxu0 %v1317_v33  ;;  %v1397_v33 = vld [vmem:[#allocation6 + $0x2a0] ss:$8 sps:$4 sm:$0xff]  }
  0x63   :  { %755 = vmatpush1.bf16.xpose.msra.mxu1 %v1318_v34  ;;  %703 = vmatprep.subr.bf16.mxu0 %v1319_v35  ;;  %v1402_v34 = vld [vmem:[#allocation6 + $0x2b4] ss:$8 sps:$4 sm:$0xff]   ;;  %v1400_v35 = vld [vmem:[#allocation6 + $0x2b0] ss:$8 sps:$4 sm:$0xff]  }
  0x64   :  { %756 = vmatprep.subr.bf16.mxu1 %v1321_v36  ;;  %v1405_v36 = vld [vmem:[#allocation6 + $0x2c4] ss:$8 sps:$4 sm:$0xff]  }
  0x6a   :  { %704 = vmatpush1.bf16.xpose.msra.mxu0 %v1323_v37  ;;  %v1403_v37 = vld [vmem:[#allocation6 + $0x2c0] ss:$8 sps:$4 sm:$0xff]  }
  0x6b   :  { %757 = vmatpush1.bf16.xpose.msra.mxu1 %v1324_v38  ;;  %705 = vmatprep.subr.bf16.mxu0 %v1325_v39  ;;  %v1408_v38 = vld [vmem:[#allocation6 + $0x2d4] ss:$8 sps:$4 sm:$0xff]   ;;  %v1406_v39 = vld [vmem:[#allocation6 + $0x2d0] ss:$8 sps:$4 sm:$0xff]  }
  0x6c   :  { %758 = vmatprep.subr.bf16.mxu1 %v1327_v40  ;;  %v1411_v40 = vld [vmem:[#allocation6 + $0x2e4] ss:$8 sps:$4 sm:$0xff]  }
  0x72   :  { %706 = vmatpush1.bf16.xpose.msra.mxu0 %v1329_v41  ;;  %v1409_v41 = vld [vmem:[#allocation6 + $0x2e0] ss:$8 sps:$4 sm:$0xff]  }
  0x73   :  { %759 = vmatpush1.bf16.xpose.msra.mxu1 %v1330_v42  ;;  %707 = vmatprep.subr.bf16.mxu0 %v1331_v43  ;;  %v1414_v42 = vld [vmem:[#allocation6 + $0x2f4] ss:$8 sps:$4 sm:$0xff]   ;;  %v1412_v43 = vld [vmem:[#allocation6 + $0x2f0] ss:$8 sps:$4 sm:$0xff]  }
  0x74   :  { %760 = vmatprep.subr.bf16.mxu1 %v1333_v44  ;;  %v923_v44 = vlaneseq }
  0x7a   :  { %708 = vmatpush1.bf16.xpose.msra.mxu0 %v1335_v45  ;;  %v1614_v45 = vshrl.u32 %v923_v44, 7 }
  0x7b   :  { %761 = vmatpush1.bf16.xpose.msra.mxu1 %v1336_v46  ;;  %709 = vmatprep.subr.bf16.mxu0 %v1337_v47 }
  0x7c   :  { %762 = vmatprep.subr.bf16.mxu1 %v1339_v48  ;;  %v925_v46 = vsub.s32 0, %v1614_v45  ;;  %v933_v47 = vsub.s32 2, %v1614_v45  ;;  %v1621_v48 = vld [vmem:[%s1687_s2] sm:$0x3f]  ;;  %s1539_s2 = smov [#allocation9]  }
  0x7d   :  { %s1078_s21 = sshll.u32 %s1539_s2, 4  ;;  %s1079_s21 = int_to_ptr.vmem [resolvable:$true] %s1078_s21 }
  0x7e   :  { %s1459_s24 = scalar_lea.vmem %s1079_s21, 512  ;;  %p1464_p3 = scmp.lt.s32.totalorder %s1079_s21, %s1079_s21 }
  0x7f   :  { %p1460_p2 = scmp.ne.s32.totalorder %s1079_s21, %s1459_s24  ;;  %p1465_p4 = scmp.lt.s32.totalorder %s1459_s24, %s1459_s24 }
  0x81   :  { %p1466_p5 = por %p1465_p4, %p1464_p3 }
  0x82   :  { %710 = vmatpush1.bf16.xpose.msra.mxu0 %v1341_v49  ;;  %v929_v49 = vsub.s32 1, %v1614_v45 }
  0x83   :  { %763 = vmatpush1.bf16.xpose.msra.mxu1 %v1342_v50  ;;  %711 = vmatprep.subr.bf16.mxu0 %v1343_v51  ;;  %v937_v50 = vsub.s32 3, %v1614_v45  ;;  %v926_v51 = vrot.slane %v1621_v48, %v925_v46  ;;  %p1467_p6 = pnand %p1466_p5, %p1460_p2 }
  0x84   :  { %764 = vmatprep.subr.bf16.mxu1 %v1345_v52  ;;  %v934_v52 = vrot.slane %v1621_v48, %v933_v47 }
  0x8a   :  { %712 = vmatpush1.bf16.xpose.msra.mxu0 %v1347_v53  ;;  %v930_v53 = vrot.slane %v1621_v48, %v929_v49 }
  0x8b   :  { %765 = vmatpush1.bf16.xpose.msra.mxu1 %v1348_v54  ;;  %713 = vmatprep.subr.bf16.mxu0 %v1349_v55  ;;  %v938_v54 = vrot.slane %v1621_v48, %v937_v50 }
  0x8c   :  { %766 = vmatprep.subr.bf16.mxu1 %v1351_v56 }
  0x92   :  { %714 = vmatpush1.bf16.xpose.msra.mxu0 %v1353_v57 }
  0x93   :  { %767 = vmatpush1.bf16.xpose.msra.mxu1 %v1354_v58  ;;  %715 = vmatprep.subr.bf16.mxu0 %v1355_v59 }
  0x94   :  { %768 = vmatprep.subr.bf16.mxu1 %v1357_v60 }
  0x9a   :  { %716 = vmatpush1.bf16.xpose.msra.mxu0 %v1359_v61 }
  0x9b   :  { %769 = vmatpush1.bf16.xpose.msra.mxu1 %v1360_v62  ;;  %717 = vmatprep.subr.bf16.mxu0 %v1361_v63 }
  0x9c   :  { %770 = vmatprep.subr.bf16.mxu1 %v1363_v0 }
  0xa2   :  { %718 = vmatpush1.bf16.xpose.msra.mxu0 %v1365_v1 }
  0xa3   :  { %771 = vmatpush1.bf16.xpose.msra.mxu1 %v1366_v2  ;;  %793 = vmatprep.subr.bf16.mxu0 %v1369_v3 }
  0xa4   :  { %1230 = vmatprep.subr.bf16.mxu1 %v1369_v3 }
  0xa9   :  { %720 = vmatmul.mubr.bf16.vlgmr.msra.gmra.mrb[0].mxu0 %v1603_v6 }
  0xaa   :  { %773 = vmatmul.mubr.bf16.vlgmr.msra.gmra.mrb[0].mxu1 %v1603_v6  ;;  %794 = vmatpush1.bf16.xpose.msra.mxu0 %v1367_v9 }
  0xab   :  { %1246 = vmatpush1.bf16.xpose.msra.mxu1 %v1367_v9  ;;  %795 = vmatprep.subr.bf16.mxu0 %v1372_v10 }
  0xac   :  { %1231 = vmatprep.subr.bf16.mxu1 %v1372_v10  ;;  %729 = vmatprep.mubr.bf16.mxu0 %v110_v11 }
  0xad   :  { %782 = vmatprep.mubr.bf16.mxu1 %v110_v11 }
  0xb1   :  { %730 = vmatmul.mubr.bf16.gmra.mrb[4].mxu0 %v1607_v14 }
  0xb2   :  { %783 = vmatmul.mubr.bf16.gmra.mrb[4].mxu1 %v1607_v14  ;;  %796 = vmatpush1.bf16.xpose.msra.mxu0 %v1370_v15 }
  0xb3   :  { %1247 = vmatpush1.bf16.xpose.msra.mxu1 %v1370_v15  ;;  %797 = vmatprep.subr.bf16.mxu0 %v1375_v16 }
  0xb4   :  { %1232 = vmatprep.subr.bf16.mxu1 %v1375_v16  ;;  %825 = vmatprep.mubr.bf16.mxu0 %v1599_v28  ;;  %v1393_v28 = vld [vmem:[#allocation6 + $0x284] ss:$8 sps:$4 sm:$0xff]  }
  0xb5   :  { %835 = vmatprep.mubr.bf16.mxu1 %v110_v11 }
  0xba   :  { %798 = vmatpush1.bf16.xpose.msra.mxu0 %v1373_v17 }
  0xbb   :  { %1248 = vmatpush1.bf16.xpose.msra.mxu1 %v1373_v17  ;;  %799 = vmatprep.subr.bf16.mxu0 %v1378_v18 }
  0xbc   :  { %1233 = vmatprep.subr.bf16.mxu1 %v1378_v18 }
  0xc2   :  { %800 = vmatpush1.bf16.xpose.msra.mxu0 %v1376_v19 }
  0xc3   :  { %1249 = vmatpush1.bf16.xpose.msra.mxu1 %v1376_v19  ;;  %801 = vmatprep.subr.bf16.mxu0 %v1381_v20 }
  0xc4   :  { %1234 = vmatprep.subr.bf16.mxu1 %v1381_v20 }
  0xca   :  { %802 = vmatpush1.bf16.xpose.msra.mxu0 %v1379_v21 }
  0xcb   :  { %1250 = vmatpush1.bf16.xpose.msra.mxu1 %v1379_v21  ;;  %803 = vmatprep.subr.bf16.mxu0 %v1384_v22 }
  0xcc   :  { %1235 = vmatprep.subr.bf16.mxu1 %v1384_v22 }
  0xd2   :  { %804 = vmatpush1.bf16.xpose.msra.mxu0 %v1382_v23 }
  0xd3   :  { %1251 = vmatpush1.bf16.xpose.msra.mxu1 %v1382_v23  ;;  %805 = vmatprep.subr.bf16.mxu0 %v1387_v24 }
  0xd4   :  { %1236 = vmatprep.subr.bf16.mxu1 %v1387_v24 }
  0xda   :  { %806 = vmatpush1.bf16.xpose.msra.mxu0 %v1385_v25 }
  0xdb   :  { %1252 = vmatpush1.bf16.xpose.msra.mxu1 %v1385_v25  ;;  %807 = vmatprep.subr.bf16.mxu0 %v1390_v26 }
  0xdc   :  { %1237 = vmatprep.subr.bf16.mxu1 %v1390_v26 }
  0xe2   :  { %808 = vmatpush1.bf16.xpose.msra.mxu0 %v1388_v27 }
  0xe3   :  { %1253 = vmatpush1.bf16.xpose.msra.mxu1 %v1388_v27  ;;  %809 = vmatprep.subr.bf16.mxu0 %v1393_v28 }
  0xe4   :  { %1238 = vmatprep.subr.bf16.mxu1 %v1393_v28 }
  0xea   :  { %810 = vmatpush1.bf16.xpose.msra.mxu0 %v1391_v29 }
  0xeb   :  { %1254 = vmatpush1.bf16.xpose.msra.mxu1 %v1391_v29  ;;  %811 = vmatprep.subr.bf16.mxu0 %v1396_v30 }
  0xec   :  { %1239 = vmatprep.subr.bf16.mxu1 %v1396_v30 }
  0xf2   :  { %812 = vmatpush1.bf16.xpose.msra.mxu0 %v1394_v31 }
  0xf3   :  { %1255 = vmatpush1.bf16.xpose.msra.mxu1 %v1394_v31  ;;  %813 = vmatprep.subr.bf16.mxu0 %v1399_v32 }
  0xf4   :  { %1240 = vmatprep.subr.bf16.mxu1 %v1399_v32 }
  0xfa   :  { %814 = vmatpush1.bf16.xpose.msra.mxu0 %v1397_v33 }
  0xfb   :  { %1256 = vmatpush1.bf16.xpose.msra.mxu1 %v1397_v33  ;;  %815 = vmatprep.subr.bf16.mxu0 %v1402_v34 }
  0xfc   :  { %1241 = vmatprep.subr.bf16.mxu1 %v1402_v34 }
 0x102   :  { %816 = vmatpush1.bf16.xpose.msra.mxu0 %v1400_v35 }
 0x103   :  { %1257 = vmatpush1.bf16.xpose.msra.mxu1 %v1400_v35  ;;  %817 = vmatprep.subr.bf16.mxu0 %v1405_v36 }
 0x104   :  { %1242 = vmatprep.subr.bf16.mxu1 %v1405_v36 }
 0x10a   :  { %818 = vmatpush1.bf16.xpose.msra.mxu0 %v1403_v37 }
 0x10b   :  { %1258 = vmatpush1.bf16.xpose.msra.mxu1 %v1403_v37  ;;  %819 = vmatprep.subr.bf16.mxu0 %v1408_v38 }
 0x10c   :  { %1243 = vmatprep.subr.bf16.mxu1 %v1408_v38 }
 0x112   :  { %820 = vmatpush1.bf16.xpose.msra.mxu0 %v1406_v39 }
 0x113   :  { %1259 = vmatpush1.bf16.xpose.msra.mxu1 %v1406_v39  ;;  %821 = vmatprep.subr.bf16.mxu0 %v1411_v40 }
 0x114   :  { %1244 = vmatprep.subr.bf16.mxu1 %v1411_v40 }
 0x11a   :  { %822 = vmatpush1.bf16.xpose.msra.mxu0 %v1409_v41 }
 0x11b   :  { %1260 = vmatpush1.bf16.xpose.msra.mxu1 %v1409_v41  ;;  %823 = vmatprep.subr.bf16.mxu0 %v1414_v42 }
 0x11c   :  { %1245 = vmatprep.subr.bf16.mxu1 %v1414_v42 }
 0x122   :  { %824 = vmatpush1.bf16.xpose.msra.mxu0 %v1412_v43 }
 0x123   :  { %1261 = vmatpush1.bf16.xpose.msra.mxu1 %v1412_v43 }
 0x129   :  { %826 = vmatmul.mubr.bf16.vlgmr.msra.gmra.mrb[8].mxu0 %v1603_v6 }
 0x12a   :  { %836 = vmatmul.mubr.bf16.vlgmr.msra.gmra.mrb[8].mxu1 %v1607_v14 }
 0x17c   :  { %v721_v55 = vpop.f32.mrb[0].mxu0 }
 0x17d   :  { %v774_v56 = vpop.f32.mrb[0].mxu1  ;;  %v953_v57 = vadd.f32 %v926_v51, %v721_v55  ;;  %v723_v59 = vpop.f32.mrb[1].mxu0 }
 0x17e   :  { %v955_v58 = vadd.f32 %v934_v52, %v774_v56  ;;  %v776_v60 = vpop.f32.mrb[1].mxu1  ;;  %v954_v61 = vadd.f32 %v930_v53, %v723_v59  ;;  %v725_v63 = vpop.f32.mrb[2].mxu0 }
 0x17f   :  { %v956_v62 = vadd.f32 %v938_v54, %v776_v60  ;;  %v778_v0 = vpop.f32.mrb[2].mxu1  ;;  %v959_v1 = vadd.f32 %v926_v51, %v725_v63  ;;  %v727_v3 = vpop.f32.mrb[3].mxu0 }
 0x180   :  { %v961_v2 = vadd.f32 %v934_v52, %v778_v0  ;;  %v780_v4 = vpop.f32.mrb[3].mxu1  ;;  %v1218_v5 = vpack.c.bf16 %v954_v61, %v953_v57  ;;  %v960_v7 = vadd.f32 %v930_v53, %v727_v3 }
 0x181   :  { %v1222_v6 = vpack.c.bf16 %v956_v62, %v955_v58  ;;  %v962_v8 = vadd.f32 %v938_v54, %v780_v4 }
 0x182   :  { %1001 = vst [vmem:[#allocation8] sm:$0xff] %v1218_v5  ;;  %v1219_v9 = vpack.c.bf16 %v960_v7, %v959_v1 }
 0x183   :  { %1029 = vst [vmem:[#allocation9] sm:$0xff] %v1222_v6  ;;  %v1223_v10 = vpack.c.bf16 %v962_v8, %v961_v2 }
 0x184   :  { %1002 = vst [vmem:[#allocation8 + $0x8] sm:$0xff] %v1219_v9  ;;  %v731_v11 = vpop.f32.mrb[4].mxu0 }
 0x185   :  { %1030 = vst [vmem:[#allocation9 + $0x8] sm:$0xff] %v1223_v10  ;;  %v784_v12 = vpop.f32.mrb[4].mxu1  ;;  %v965_v13 = vadd.f32 %v926_v51, %v731_v11  ;;  %v733_v15 = vpop.f32.mrb[5].mxu0 }
 0x186   :  { %v967_v14 = vadd.f32 %v934_v52, %v784_v12  ;;  %v786_v16 = vpop.f32.mrb[5].mxu1  ;;  %v966_v17 = vadd.f32 %v930_v53, %v733_v15  ;;  %v735_v19 = vpop.f32.mrb[6].mxu0 }
 0x187   :  { %v968_v18 = vadd.f32 %v938_v54, %v786_v16  ;;  %v788_v20 = vpop.f32.mrb[6].mxu1  ;;  %v971_v21 = vadd.f32 %v926_v51, %v735_v19  ;;  %v737_v23 = vpop.f32.mrb[7].mxu0 }
 0x188   :  { %v973_v22 = vadd.f32 %v934_v52, %v788_v20  ;;  %v790_v24 = vpop.f32.mrb[7].mxu1  ;;  %v1220_v25 = vpack.c.bf16 %v966_v17, %v965_v13  ;;  %v972_v27 = vadd.f32 %v930_v53, %v737_v23 }
 0x189   :  { %v1224_v26 = vpack.c.bf16 %v968_v18, %v967_v14  ;;  %v974_v28 = vadd.f32 %v938_v54, %v790_v24 }
 0x18a   :  { %1003 = vst [vmem:[#allocation8 + $0x10] sm:$0xff] %v1220_v25  ;;  %v1221_v29 = vpack.c.bf16 %v972_v27, %v971_v21 }
 0x18b   :  { %1031 = vst [vmem:[#allocation9 + $0x10] sm:$0xff] %v1224_v26  ;;  %v1225_v30 = vpack.c.bf16 %v974_v28, %v973_v22 }
 0x18c   :  { %1004 = vst [vmem:[#allocation8 + $0x18] sm:$0xff] %v1221_v29 }
 0x18d   :  { %1032 = vst [vmem:[#allocation9 + $0x18] sm:$0xff] %v1225_v30 }
 0x18e   :  { %1470 = shalt.err (!%p1467_p6)
}
 0x18f   :  { %s1471_s27 = scalar_lea.hbm %s1689_s4, 512 }
 0x190   :  { %p1472_p7 = scmp.ne.s32.totalorder %s1689_s4, %s1471_s27  ;;  %p1475_p8 = scmp.lt.u32.totalorder %s1471_s27, %s1689_s4 }
 0x192   :  { %p1477_p9 = pnand %p1475_p8, %p1472_p7 }
 0x194   :  { %1480 = shalt.err (!%p1477_p9)
}
 0x195   :  { %1084 = dma.vmem_to_hbm [thread:$0]  %s1079_s21, 512, %s1689_s4, [#allocation10], %s1537_s0, %s1537_s0, %s1538_s17  }
 0x196   :  { %s1481_s9 = scalar_lea.vmem %s1629_s23, 512  ;;  %p1486_p11 = scmp.lt.s32.totalorder %s1629_s23, %s1629_s23 }
 0x197   :  { %p1482_p10 = scmp.ne.s32.totalorder %s1629_s23, %s1481_s9  ;;  %p1487_p12 = scmp.lt.s32.totalorder %s1481_s9, %s1481_s9 }
 0x199   :  { %p1488_p13 = por %p1487_p12, %p1486_p11 }
 0x19b   :  { %p1489_p0 = pnand %p1488_p13, %p1482_p10 }
 0x19d   :  { %1492 = shalt.err (!%p1489_p0)
}
 0x19e   :  { %s1493_s12 = scalar_lea.hbm %s1688_s3, 512 }
 0x19f   :  { %p1494_p1 = scmp.ne.s32.totalorder %s1688_s3, %s1493_s12  ;;  %p1497_p2 = scmp.lt.u32.totalorder %s1493_s12, %s1688_s3 }
 0x1a1   :  { %p1499_p3 = pnand %p1497_p2, %p1494_p1 }
 0x1a3   :  { %1502 = shalt.err (!%p1499_p3)
}
 0x1a4   :  { %1072 = dma.vmem_to_hbm [thread:$0]  %s1629_s23, 512, %s1688_s3, [#allocation5], %s1537_s0, %s1537_s0, %s1538_s17   ;;  %v941_v31 = vsub.s32 4, %v1614_v45  ;;  %v945_v32 = vsub.s32 5, %v1614_v45 }
 0x1a5   :  { %s1541_s3 = smov [#allocation11]  }
 0x1a6   :  { %v942_v33 = vrot.slane %v1621_v48, %v941_v31  ;;  %v946_v34 = vrot.slane %v1621_v48, %v945_v32  ;;  %s1090_s19 = sshll.u32 %s1541_s3, 4  ;;  %s1091_s19 = int_to_ptr.vmem [resolvable:$true] %s1090_s19 }
 0x1a7   :  { %s1503_s1 = scalar_lea.vmem %s1091_s19, 512  ;;  %p1508_p5 = scmp.lt.s32.totalorder %s1091_s19, %s1091_s19 }
 0x1a8   :  { %p1504_p4 = scmp.ne.s32.totalorder %s1091_s19, %s1503_s1  ;;  %p1509_p6 = scmp.lt.s32.totalorder %s1503_s1, %s1503_s1 }
 0x1aa   :  { %p1510_p7 = por %p1509_p6, %p1508_p5 }
 0x1ac   :  { %p1511_p8 = pnand %p1510_p7, %p1504_p4 }
 0x1fc   :  { %v827_v35 = vpop.f32.mrb[8].mxu0 }
 0x1fd   :  { %v837_v36 = vpop.f32.mrb[8].mxu1  ;;  %v957_v37 = vadd.f32 %v942_v33, %v827_v35  ;;  %v829_v39 = vpop.f32.mrb[9].mxu0 }
 0x1fe   :  { %v969_v38 = vadd.f32 %v942_v33, %v837_v36  ;;  %v839_v40 = vpop.f32.mrb[9].mxu1  ;;  %v958_v41 = vadd.f32 %v946_v34, %v829_v39  ;;  %v831_v43 = vpop.f32.mrb[10].mxu0 }
 0x1ff   :  { %v970_v42 = vadd.f32 %v946_v34, %v839_v40  ;;  %v841_v44 = vpop.f32.mrb[10].mxu1  ;;  %v963_v46 = vadd.f32 %v942_v33, %v831_v43  ;;  %v833_v49 = vpop.f32.mrb[11].mxu0 }
 0x200   :  { %v975_v47 = vadd.f32 %v942_v33, %v841_v44  ;;  %v843_v50 = vpop.f32.mrb[11].mxu1  ;;  %v1226_v45 = vpack.c.bf16 %v958_v41, %v957_v37  ;;  %v964_v52 = vadd.f32 %v946_v34, %v833_v49 }
 0x201   :  { %v1228_v51 = vpack.c.bf16 %v970_v42, %v969_v38  ;;  %v976_v48 = vadd.f32 %v946_v34, %v843_v50 }
 0x202   :  { %1057 = vst [vmem:[#allocation11] sm:$0xff] %v1226_v45  ;;  %v1227_v53 = vpack.c.bf16 %v964_v52, %v963_v46 }
 0x203   :  { %1059 = vst [vmem:[#allocation11 + $0x10] sm:$0xff] %v1228_v51  ;;  %v1229_v54 = vpack.c.bf16 %v976_v48, %v975_v47 }
 0x204   :  { %1058 = vst [vmem:[#allocation11 + $0x8] sm:$0xff] %v1227_v53 }
 0x205   :  { %1060 = vst [vmem:[#allocation11 + $0x18] sm:$0xff] %v1229_v54 }
 0x206   :  { %1514 = shalt.err (!%p1511_p8)
}
 0x207   :  { %s1515_s21 = scalar_lea.hbm %s1690_s5, 512 }
 0x208   :  { %p1516_p9 = scmp.ne.s32.totalorder %s1690_s5, %s1515_s21  ;;  %p1519_p10 = scmp.lt.u32.totalorder %s1515_s21, %s1690_s5 }
 0x20a   :  { %p1521_p11 = pnand %p1519_p10, %p1516_p9 }
 0x20c   :  { %1524 = shalt.err (!%p1521_p11)
}
 0x20d   :  { %1096 = dma.vmem_to_hbm [thread:$0]  %s1091_s19, 512, %s1690_s5, [#allocation10], %s1537_s0, %s1537_s0, %s1538_s17  }
 0x20e   :  { %1529 = dma.done.wait [#allocation5], 512  }
 0x20f   :  { %1530 = vsyncadd [#allocation5], 4294966784 }
 0x210   :  { %1531 = dma.done.wait [#allocation10], 1024  }
 0x211   :  { %1532 = vsyncadd [#allocation10], 4294966272 }
 0x212   :  { %1106 = vsyncpa [#allocation4], 1 }
 0x213   :  { %1107 = vsyncpa [#allocation7], 1 }
 0x214   :  { %1108 = vsyncpa [#allocation5], 1 }
 0x215   :  { %1109 = vsyncpa [#allocation10], 1 }

</bundles_post_ra>
